<compile_context>
chip_gen: v7x
topology: tpu7x:2x2x1
jax: 0.10.0
libtpu: 0.0.40
codegen_flags: <defaults>
</compile_context>

<pallas_src>
import functools

import jax
import jax.numpy as jnp
from jax.experimental import pallas as pl
from jax.experimental.pallas import tpu as pltpu

INPUT_DIM = 21
HIDDEN_DIM = 200
OUTPUT_DIM = 1
NUM_HIDDEN = 1        # exactly one hidden Linear, matching the module config
# activation = None -> forward applies no nonlinearity


def _round_up(n, m):
    return ((n + m - 1) // m) * m


# -----------------------------------------------------------------------------
# Fast path: activation is None  ->  collapse the three Linears into one.
# -----------------------------------------------------------------------------
def _fused_linear_kernel(x_ref, w_ref, b_ref, o_ref):
    # (TB, KP) * (1, KP) -> lane reduce -> (TB, 1).  Pure VPU/XLU work in exact
    # f32; avoids a degenerate N=1 MXU matmul and its masked single-lane store.
    o_ref[...] = (
        jnp.sum(x_ref[...] * w_ref[...], axis=1, keepdims=True) + b_ref[...]
    ).astype(o_ref.dtype)


def feedforward_pallas(x, w1, b1, w2, b2, w3, b3, *, batch_tile=256):
    """Forward pass of FeedforwardNeuralNetModel for the activation=None config."""
    # TODO(synk): if `activation` is ever non-None this algebraic fusion is
    # invalid -- use feedforward_pallas_layers and apply the activation there.
    hi = jax.lax.Precision.HIGHEST
    w_fused = jnp.dot(jnp.dot(w1, w2, precision=hi), w3, precision=hi)     # (K, 1)
    b_fused = (jnp.dot(jnp.dot(b1, w2, precision=hi), w3, precision=hi)
               + jnp.dot(b2, w3, precision=hi) + b3)                       # (1, 1)

    batch, k = x.shape
    n_out = w3.shape[1]
    kp = _round_up(k, 32)                       # 21 -> 32 (128 B rows, 8-aligned)
    tb = min(batch_tile, _round_up(batch, 8))   # 256-row tiles; shrink for tiny B
    bp = _round_up(batch, tb)

    x_p = jnp.pad(x, ((0, bp - batch), (0, kp - k)))
    w_row = jnp.pad(w_fused.T, ((0, 0), (0, kp - k)))                      # (1, KP)

    out = pl.pallas_call(
        _fused_linear_kernel,
        out_shape=jax.ShapeDtypeStruct((bp, n_out), jnp.float32),
        grid=(bp // tb,),
        in_specs=[
            pl.BlockSpec((tb, kp), lambda i: (i, 0)),   # batch tile of x
            pl.BlockSpec((1, kp), lambda i: (0, 0)),    # fused weight (VMEM-resident)
            pl.BlockSpec((1, 1), lambda i: (0, 0)),     # fused bias   (VMEM-resident)
        ],
        out_specs=pl.BlockSpec((tb, n_out), lambda i: (i, 0)),
        compiler_params=pltpu.CompilerParams(
            dimension_semantics=("parallel",),          # v7x megacore batch split
        ),
    )(x_p, w_row, b_fused)
    return out[:batch]


# -----------------------------------------------------------------------------
# General path: keeps the per-layer matmuls (needed once an activation exists).
# -----------------------------------------------------------------------------
def _mlp_layers_kernel(x_ref, w1_ref, b1_ref, w2_ref, b2_ref, w3_ref, b3_ref, o_ref):
    h = jnp.dot(x_ref[...], w1_ref[...],
                preferred_element_type=jnp.float32) + b1_ref[...]
    # activation would be applied here; the module config uses activation=None
    h = jnp.dot(h, w2_ref[...],
                preferred_element_type=jnp.float32) + b2_ref[...]
    o_ref[...] = (jnp.dot(h, w3_ref[...],
                          preferred_element_type=jnp.float32)
                  + b3_ref[...]).astype(o_ref.dtype)


def feedforward_pallas_layers(x, w1, b1, w2, b2, w3, b3, *, batch_tile=256):
    batch, k = x.shape
    h_dim = w1.shape[1]
    n = w3.shape[1]

    kp = _round_up(k, 32)          # 21  -> 32  (sublane side of W1 / lane side of x)
    hp = _round_up(h_dim, 128)     # 200 -> 256 (lane-dense hidden tiles)
    n_p = _round_up(n, 128)        # 1   -> 128 (unmasked stores, clean MXU tile)
    tb = min(batch_tile, _round_up(batch, 8))
    bp = _round_up(batch, tb)

    x_p = jnp.pad(x, ((0, bp - batch), (0, kp - k)))
    w1p = jnp.pad(w1, ((0, kp - k), (0, hp - h_dim)))
    b1p = jnp.pad(b1, ((0, 0), (0, hp - h_dim)))
    w2p = jnp.pad(w2, ((0, hp - h_dim), (0, hp - h_dim)))
    b2p = jnp.pad(b2, ((0, 0), (0, hp - h_dim)))
    w3p = jnp.pad(w3, ((0, hp - h_dim), (0, n_p - n)))
    b3p = jnp.pad(b3, ((0, 0), (0, n_p - n)))

    resident = lambda i: (0, 0)    # weights/biases: same block every grid step
    out = pl.pallas_call(
        _mlp_layers_kernel,
        out_shape=jax.ShapeDtypeStruct((bp, n_p), jnp.float32),
        grid=(bp // tb,),
        in_specs=[
            pl.BlockSpec((tb, kp), lambda i: (i, 0)),
            pl.BlockSpec((kp, hp), resident), pl.BlockSpec((1, hp), resident),
            pl.BlockSpec((hp, hp), resident), pl.BlockSpec((1, hp), resident),
            pl.BlockSpec((hp, n_p), resident), pl.BlockSpec((1, n_p), resident),
        ],
        out_specs=pl.BlockSpec((tb, n_p), lambda i: (i, 0)),
        compiler_params=pltpu.CompilerParams(
            dimension_semantics=("parallel",),
        ),
    )(x_p, w1p, b1p, w2p, b2p, w3p, b3p)
    return out[:batch, :n]


# -----------------------------------------------------------------------------
# Params / reference
# -----------------------------------------------------------------------------
def init_params(key):
    """Deterministic init, PyTorch-Linear-style uniform(-1/sqrt(fan_in), 1/sqrt(fan_in))."""
    keys = jax.random.split(key, 6)

    def linear(kw, kb, fan_in, fan_out):
        bound = 1.0 / jnp.sqrt(fan_in)
        w = jax.random.uniform(kw, (fan_in, fan_out), jnp.float32, -bound, bound)
        b = jax.random.uniform(kb, (1, fan_out), jnp.float32, -bound, bound)
        return w, b

    w1, b1 = linear(keys[0], keys[1], INPUT_DIM, HIDDEN_DIM)
    w2, b2 = linear(keys[2], keys[3], HIDDEN_DIM, HIDDEN_DIM)
    w3, b3 = linear(keys[4], keys[5], HIDDEN_DIM, OUTPUT_DIM)
    return w1, b1, w2, b2, w3, b3


def reference_forward(x, w1, b1, w2, b2, w3, b3, precision=None):
    dot = functools.partial(jnp.dot, precision=precision)
    h = dot(x, w1) + b1
    h = dot(h, w2) + b2          # activation is None -> no nonlinearity
    return dot(h, w3) + b3


if __name__ == "__main__":
    key = jax.random.PRNGKey(0)
    k_x, k_p = jax.random.split(key)
    params = init_params(k_p)

    fused_fn = jax.jit(feedforward_pallas)
    layers_fn = jax.jit(feedforward_pallas_layers)

    for batch in (8, 300):       # 300 exercises multi-tile grid + batch padding
        x = jax.random.normal(jax.random.fold_in(k_x, batch),
                              (batch, INPUT_DIM), jnp.float32)

        # High-precision reference (the fused path does exact-f32 VPU math).
        ref_hi = reference_forward(x, *params, precision=jax.lax.Precision.HIGHEST)
        # Default-precision reference (matches the in-kernel MXU matmuls).
        ref_def = reference_forward(x, *params)

        out_fused = jax.block_until_ready(fused_fn(x, *params))
        assert out_fused.shape == (batch, OUTPUT_DIM)
        assert jnp.allclose(out_fused, ref_hi, atol=1e-4, rtol=1e-4), (
            float(jnp.max(jnp.abs(out_fused - ref_hi))))

        out_layers = jax.block_until_ready(layers_fn(x, *params))
        assert out_layers.shape == (batch, OUTPUT_DIM)
        assert jnp.allclose(out_layers, ref_def, atol=1e-4, rtol=1e-4), (
            float(jnp.max(jnp.abs(out_layers - ref_def))))

    print("KERNEL_OK")
</pallas_src>

<mosaic_0001>
module attributes {stable_mosaic.version = 11 : i64} {
  func.func @_fused_linear_kernel(%arg0: i32, %arg1: memref<8x32xf32, #tpu.memory_space<vmem>>, %arg2: memref<1x32xf32, #tpu.memory_space<vmem>>, %arg3: memref<1x1xf32, #tpu.memory_space<vmem>>, %arg4: memref<8x1xf32, #tpu.memory_space<vmem>>) attributes {dimension_semantics = [#tpu.dimension_semantics<parallel>], iteration_bounds = array<i64: 1>, scalar_prefetch = 0 : i64, scratch_operands = 0 : i64, tpu.core_type = #tpu.core_type<tc>, window_params = [{transform_indices = @transform_0, window_bounds = array<i64: 8, 32>}, {pipeline_mode = #tpu.pipeline_mode<synchronous>, transform_indices = @transform_1, window_bounds = array<i64: 1, 32>}, {pipeline_mode = #tpu.pipeline_mode<synchronous>, transform_indices = @transform_2, window_bounds = array<i64: 1, 1>}, {transform_indices = @transform_3, window_bounds = array<i64: 8, 1>}]} {
    %c0 = arith.constant 0 : index
    %c0_0 = arith.constant 0 : index
    %0 = vector.load %arg1[%c0, %c0_0] : memref<8x32xf32, #tpu.memory_space<vmem>>, vector<8x32xf32>
    %c0_1 = arith.constant 0 : index
    %c0_2 = arith.constant 0 : index
    %1 = vector.load %arg2[%c0_1, %c0_2] : memref<1x32xf32, #tpu.memory_space<vmem>>, vector<1x32xf32>
    %2 = vector.broadcast %1 : vector<1x32xf32> to vector<8x32xf32>
    %3 = arith.mulf %0, %2 : vector<8x32xf32>
    %cst = arith.constant dense<0.000000e+00> : vector<8xf32>
    %4 = vector.multi_reduction <add>, %3, %cst [1] : vector<8x32xf32> to vector<8xf32>
    %5 = vector.shape_cast %4 : vector<8xf32> to vector<8x1xf32>
    %c0_3 = arith.constant 0 : index
    %c0_4 = arith.constant 0 : index
    %6 = vector.load %arg3[%c0_3, %c0_4] : memref<1x1xf32, #tpu.memory_space<vmem>>, vector<1x1xf32>
    %7 = vector.broadcast %6 : vector<1x1xf32> to vector<8x1xf32>
    %8 = arith.addf %5, %7 : vector<8x1xf32>
    %c0_5 = arith.constant 0 : index
    %c0_6 = arith.constant 0 : index
    %9 = vector.load %arg4[%c0_5, %c0_6] : memref<8x1xf32, #tpu.memory_space<vmem>>, vector<8x1xf32>
    tpu.vector_store %arg4[%c0_5, %c0_6], %8 {strides = array<i32>} : memref<8x1xf32, #tpu.memory_space<vmem>>, vector<8x1xf32>,
    return
  }
  func.func @transform_0(%arg0: i32) -> (i32, i32) {
    %c0_i32 = arith.constant 0 : i32
    %c0_i32_0 = arith.constant 0 : i32
    return %arg0, %c0_i32 : i32, i32
  }
  func.func @transform_1(%arg0: i32) -> (i32, i32) {
    %c0_i32 = arith.constant 0 : i32
    %c0_i32_0 = arith.constant 0 : i32
    %c0_i32_1 = arith.constant 0 : i32
    return %c0_i32, %c0_i32_0 : i32, i32
  }
  func.func @transform_2(%arg0: i32) -> (i32, i32) {
    %c0_i32 = arith.constant 0 : i32
    %c0_i32_0 = arith.constant 0 : i32
    %c0_i32_1 = arith.constant 0 : i32
    return %c0_i32, %c0_i32_0 : i32, i32
  }
  func.func @transform_3(%arg0: i32) -> (i32, i32) {
    %c0_i32 = arith.constant 0 : i32
    %c0_i32_0 = arith.constant 0 : i32
    return %arg0, %c0_i32 : i32, i32
  }
}

</mosaic_0001>

<bundles_post_ra>
// kernel: feedforward_pallas.1
= control target key start
LH: loop header
LB: loop body
LE: loop exit
PB: predicated region body
PF: predicated region fallthrough
CT: control target
= control target key end

     0   :  { %vm25_vm0 = vcmask 261120   ;;  %vm37_vm1 = vcmask 7168   ;;  %s77_s0 = inlined_call_operand.vmem [shape: f32[8,32], index: 0, kind: input, shape index: {}]   ;;  %s78_s1 = inlined_call_operand.vmem [shape: f32[1,32], index: 1, kind: input, shape index: {}]   ;;  %s79_s2 = inlined_call_operand.<no memory space> [shape: f32[1,1], index: 2, kind: input, shape index: {}]   ;;  %s80_s3 = inlined_call_operand.vmem [shape: f32[8,1], index: 3, kind: output, shape index: {}]  }
   0x1   :  { %v16_v0 = vld [vmem:[%s77_s0] sm:$0xff]  ;;  %v8_v2 = vstv %s79_s2 }
   0x2   :  { %v43_v1 = vld [vmem:[%s78_s1] ss:$0 sm:$0xff]  ;;  %9 = vst [vmem:[#allocation2] sm:$0x1] %v8_v2 }
   0x3   :  { %v24_v3 = vmul.f32 %v43_v1, %v16_v0 }
   0x5   :  { %v26_v4 = vsel %vm25_vm0, %v24_v3, 0.0 }
   0x6   :  { %27 = vadd.xlane.f32.xlu0 %v26_v4 }
   0x9   :  { %v44_v5 = vld [vmem:[#allocation2] ss:$0 sm:$0xff] }
  0x93   :  { %v28_v6 = vpop.xlane.xlu0 %27 }
  0x94   :  { %v36_v7 = vadd.f32 %v44_v5, %v28_v6 }
  0x96   :  { %38 = vst.msk [vmem:[%s80_s3] sm:$0xff] %vm37_vm1, %v36_v7 }

</bundles_post_ra>
